<compile_context>
chip_gen: v7x
topology: tpu7x:2x2x1
jax: 0.10.0
libtpu: 0.0.40
codegen_flags: <defaults>
</compile_context>

<pallas_src>
import functools

import jax
import jax.numpy as jnp
from jax.experimental import pallas as pl
from jax.experimental.pallas import tpu as pltpu

_NEG_BIG = -1e30  # bias value for padded (invalid) output columns (softmax path)


def _head_kernel(x_ref, w_ref, b_ref, o_ref, *, activation: str, num_valid: int):
    """Classifier head: out = act(x @ W + b)[:, :num_valid].

    x_ref: [TB, D] native dtype   w_ref: [D, C_pad] bf16   b_ref: [1, C_pad] f32
    o_ref: [TB, num_valid] f32
    """
    x = x_ref[...].astype(jnp.bfloat16)  # in-kernel cast: VPU op, no extra HBM pass
    logits = (
        jnp.dot(x, w_ref[...], preferred_element_type=jnp.float32) + b_ref[...]
    )
    if activation == "softmax":
        # Full lane-width (C_pad) reductions; padded columns carry bias -1e30 so
        # their exp() contribution is ~0 and the denominator stays correct.
        m = jnp.max(logits, axis=-1, keepdims=True)
        e = jnp.exp(logits - m)
        inv = pl.reciprocal(jnp.sum(e, axis=-1, keepdims=True), approx=True)
        out = e[:, :num_valid] * inv
    elif activation == "sigmoid":
        out = jax.nn.sigmoid(logits[:, :num_valid])
    else:
        out = logits[:, :num_valid]
    o_ref[...] = out.astype(o_ref.dtype)


def _vmem_capacity_bytes() -> int:
    try:
        return int(pltpu.get_tpu_info().vmem_capacity_bytes)
    except Exception:
        return 64 << 20  # conservative fallback (v7x-class per-core VMEM)


def _choose_batch_tile(B: int, D: int, x_bytes: int, C: int,
                       w_resident_bytes: int, vmem_cap: int) -> int:
    """Largest batch tile whose double-buffered x/out tiles plus the resident
    (single-buffered) weight fit a per-generation VMEM budget."""
    if vmem_cap <= (64 << 20):       # v7x-class: keep streamed buffering modest
        stream_cap = 16 << 20
    else:                            # v5e/v6e (128 MiB): bigger tiles cut step overhead
        stream_cap = 48 << 20
    stream_budget = min(int(vmem_cap * 0.7) - w_resident_bytes - (2 << 20), stream_cap)
    stream_budget = max(stream_budget, 1 << 20)

    per_row = 2 * (D * x_bytes + C * 4)   # double-buffered x tile + out tile, per batch row
    tb = stream_budget // per_row
    if tb >= B:
        return B                          # one full-batch tile (full dims are always valid)
    if tb >= 256:
        tb = (tb // 256) * 256            # full 256-wide MXU passes on v6e/v7x
    elif tb >= 16:
        tb = (tb // 16) * 16              # bf16 packs 16 sublanes per vreg
    else:
        # Degenerate: enormous D; 16 rows is the practical floor here.
        # TODO(synk): tile the feature dim D when even 16 rows overflow VMEM.
        tb = 16 if B >= 16 else B
    return min(tb, B)


def _run_head(x, w_pad_bf16, b_pad_f32, num_valid: int, activation: str):
    """x: [B, D] (any float dtype) -> [B, num_valid] f32."""
    B, D = x.shape
    D2, C_pad = w_pad_bf16.shape
    assert D == D2 and C_pad % 128 == 0

    x_bytes = jnp.dtype(x.dtype).itemsize
    w_resident = D * C_pad * 2 + C_pad * 4          # bf16 W + f32 bias, single-buffered
    vmem_cap = _vmem_capacity_bytes()
    TB = _choose_batch_tile(B, D, x_bytes, num_valid, w_resident, vmem_cap)
    grid = (pl.cdiv(B, TB),)

    vmem_need = (
        w_resident
        + 2 * TB * D * x_bytes          # x tiles, double-buffered
        + 2 * TB * num_valid * 4        # out tiles (f32), double-buffered
    )
    vmem_limit = min(int(vmem_need * 1.5) + (2 << 20), vmem_cap)

    cost = pl.CostEstimate(
        flops=2 * B * D * C_pad,
        transcendentals=(B * C_pad) if activation in ("sigmoid", "softmax") else 0,
        bytes_accessed=B * D * x_bytes + D * C_pad * 2 + C_pad * 4 + B * num_valid * 4,
    )

    kernel = functools.partial(_head_kernel, activation=activation, num_valid=num_valid)
    return pl.pallas_call(
        kernel,
        out_shape=jax.ShapeDtypeStruct((B, num_valid), jnp.float32),
        grid_spec=pltpu.PrefetchScalarGridSpec(
            num_scalar_prefetch=0,
            grid=grid,
            in_specs=[
                # x: streamed / double-buffered.
                pl.BlockSpec((TB, D), lambda i: (i, 0)),
                # W, b: grid-invariant -> single-buffered residents.
                pl.BlockSpec((D, C_pad), lambda i: (0, 0),
                             pipeline_mode=pl.Buffered(1)),
                pl.BlockSpec((1, C_pad), lambda i: (0, 0),
                             pipeline_mode=pl.Buffered(1)),
            ],
            out_specs=pl.BlockSpec((TB, num_valid), lambda i: (i, 0)),
        ),
        compiler_params=pltpu.CompilerParams(
            dimension_semantics=("parallel",),
            vmem_limit_bytes=vmem_limit,
        ),
        cost_estimate=cost,
    )(x, w_pad_bf16, b_pad_f32)


class BaseModuleJAX:
    """JAX/Pallas analogue of BaseModule's forward/predict."""

    def __init__(self, dim: int, num_classes: int = 1, dropout: float = 0.0, seed: int = 0):
        self.num_classes = num_classes
        self.dropout = dropout  # identity at inference (and p=0.0 default)
        self.dim = dim

        # Deterministic parameter init (mimics nn.Linear's uniform init range).
        k_w, k_b = jax.random.split(jax.random.PRNGKey(seed))
        bound = 1.0 / (dim ** 0.5)
        # PyTorch nn.Linear weight is [C, D]; we store [D, C] for the kernel.
        self.w = jax.random.uniform(
            k_w, (dim, num_classes), jnp.float32, minval=-bound, maxval=bound
        )
        self.b = jax.random.uniform(
            k_b, (num_classes,), jnp.float32, minval=-bound, maxval=bound
        )

        # Lane-dense (multiple-of-128) padded parameters, precomputed once.
        c_pad = max(128, pl.cdiv(num_classes, 128) * 128)
        self._c_pad = c_pad
        self._w_pad = (
            jnp.zeros((dim, c_pad), jnp.bfloat16)
            .at[:, :num_classes]
            .set(self.w.astype(jnp.bfloat16))
        )
        self._b_pad = (
            jnp.full((1, c_pad), _NEG_BIG, jnp.float32)
            .at[0, :num_classes]
            .set(self.b)
        )

    def _backbone(self, x):
        # create_model() is abstract in BaseModule; identity feature extractor.
        return x

    def forward(self, x):
        feats = self._backbone(x)
        out = _run_head(feats, self._w_pad, self._b_pad, self.num_classes, "none")
        if self.num_classes == 1:
            out = jnp.squeeze(out, axis=-1)  # [B, 1] -> [B] (metadata reshape)
        return out

    def predict(self, x):
        feats = self._backbone(x)
        act = "sigmoid" if self.num_classes == 1 else "softmax"
        out = _run_head(feats, self._w_pad, self._b_pad, self.num_classes, act)
        if self.num_classes == 1:
            out = jnp.squeeze(out, axis=-1)  # [B]
        return out


if __name__ == "__main__":
    B, D = 8, 32
    key = jax.random.PRNGKey(0)
    x = jax.random.normal(key, (B, D), dtype=jnp.float32)

    # Reference uses the same bf16 rounding of x/W as the kernel, f32 accumulate.
    x_r = x.astype(jnp.bfloat16).astype(jnp.float32)

    # --- num_classes == 1 (binary head: squeeze + sigmoid) ---
    m1 = BaseModuleJAX(dim=D, num_classes=1, dropout=0.0, seed=0)
    logits1 = jax.block_until_ready(m1.forward(x))   # [B]
    probs1 = jax.block_until_ready(m1.predict(x))    # [B]
    w1_r = m1.w.astype(jnp.bfloat16).astype(jnp.float32)
    ref1 = jnp.squeeze(x_r @ w1_r + m1.b, axis=-1)
    assert logits1.shape == (B,)
    assert jnp.allclose(logits1, ref1, atol=1e-3, rtol=1e-3)
    assert jnp.allclose(probs1, jax.nn.sigmoid(ref1), atol=2e-3, rtol=2e-3)

    # --- num_classes > 1 (multi-class head: softmax) ---
    C = 5
    m2 = BaseModuleJAX(dim=D, num_classes=C, dropout=0.0, seed=1)
    logits2 = jax.block_until_ready(m2.forward(x))   # [B, C]
    probs2 = jax.block_until_ready(m2.predict(x))    # [B, C]
    w2_r = m2.w.astype(jnp.bfloat16).astype(jnp.float32)
    ref2 = x_r @ w2_r + m2.b
    assert logits2.shape == (B, C) and probs2.shape == (B, C)
    assert jnp.allclose(logits2, ref2, atol=1e-3, rtol=1e-3)
    assert jnp.allclose(probs2, jax.nn.softmax(ref2, axis=-1), atol=5e-3, rtol=5e-3)

    print("KERNEL_OK")
</pallas_src>

<mosaic_0001>
module attributes {stable_mosaic.version = 11 : i64} {
  func.func @_head_kernel(%arg0: i32, %arg1: memref<8x32xf32, #tpu.memory_space<vmem>>, %arg2: memref<32x128xbf16, #tpu.memory_space<vmem>>, %arg3: memref<1x128xf32, #tpu.memory_space<vmem>>, %arg4: memref<8x1xf32, #tpu.memory_space<vmem>>) attributes {dimension_semantics = [#tpu.dimension_semantics<parallel>], iteration_bounds = array<i64: 1>, scalar_prefetch = 0 : i64, scratch_operands = 0 : i64, tpu.core_type = #tpu.core_type<tc>, window_params = [{transform_indices = @transform_0, window_bounds = array<i64: 8, 32>}, {pipeline_mode = #tpu.pipeline_mode<synchronous>, transform_indices = @transform_1, window_bounds = array<i64: 32, 128>}, {pipeline_mode = #tpu.pipeline_mode<synchronous>, transform_indices = @transform_2, window_bounds = array<i64: 1, 128>}, {transform_indices = @transform_3, window_bounds = array<i64: 8, 1>}]} {
    %c0 = arith.constant 0 : index
    %c0_0 = arith.constant 0 : index
    %0 = vector.load %arg1[%c0, %c0_0] : memref<8x32xf32, #tpu.memory_space<vmem>>, vector<8x32xf32>
    %1 = arith.truncf %0 : vector<8x32xf32> to vector<8x32xbf16>
    %c0_1 = arith.constant 0 : index
    %c0_2 = arith.constant 0 : index
    %2 = vector.load %arg2[%c0_1, %c0_2] : memref<32x128xbf16, #tpu.memory_space<vmem>>, vector<32x128xbf16>
    %cst = arith.constant dense<0.000000e+00> : vector<8x128xf32>
    %3 = tpu.matmul %1, %2, %cst {dimension_numbers = #tpu.dot_dimension_numbers<[1], [0], [0], [1], [0, 0, 1, 1], [], []>} : vector<8x32xbf16>, vector<32x128xbf16>, vector<8x128xf32> -> vector<8x128xf32>
    %c0_3 = arith.constant 0 : index
    %c0_4 = arith.constant 0 : index
    %4 = vector.load %arg3[%c0_3, %c0_4] : memref<1x128xf32, #tpu.memory_space<vmem>>, vector<1x128xf32>
    %5 = vector.broadcast %4 : vector<1x128xf32> to vector<8x128xf32>
    %6 = arith.addf %3, %5 : vector<8x128xf32>
    %7 = vector.extract_strided_slice %6 {offsets = [0, 0], sizes = [8, 1], strides = [1, 1]} : vector<8x128xf32> to vector<8x1xf32>
    %c0_5 = arith.constant 0 : index
    %c0_6 = arith.constant 0 : index
    %8 = vector.load %arg4[%c0_5, %c0_6] : memref<8x1xf32, #tpu.memory_space<vmem>>, vector<8x1xf32>
    tpu.vector_store %arg4[%c0_5, %c0_6], %7 {strides = array<i32>} : memref<8x1xf32, #tpu.memory_space<vmem>>, vector<8x1xf32>,
    return
  }
  func.func @transform_0(%arg0: i32) -> (i32, i32) {
    %c0_i32 = arith.constant 0 : i32
    %c0_i32_0 = arith.constant 0 : i32
    return %arg0, %c0_i32 : i32, i32
  }
  func.func @transform_1(%arg0: i32) -> (i32, i32) {
    %c0_i32 = arith.constant 0 : i32
    %c0_i32_0 = arith.constant 0 : i32
    %c0_i32_1 = arith.constant 0 : i32
    return %c0_i32, %c0_i32_0 : i32, i32
  }
  func.func @transform_2(%arg0: i32) -> (i32, i32) {
    %c0_i32 = arith.constant 0 : i32
    %c0_i32_0 = arith.constant 0 : i32
    %c0_i32_1 = arith.constant 0 : i32
    return %c0_i32, %c0_i32_0 : i32, i32
  }
  func.func @transform_3(%arg0: i32) -> (i32, i32) {
    %c0_i32 = arith.constant 0 : i32
    %c0_i32_0 = arith.constant 0 : i32
    return %arg0, %c0_i32 : i32, i32
  }
}

</mosaic_0001>

<bundles_post_ra>
// kernel: tpu_custom_call.1
= control target key start
LH: loop header
LB: loop body
LE: loop exit
PB: predicated region body
PF: predicated region fallthrough
CT: control target
= control target key end

     0   :  { %8 = vsyncpa [#allocation3], 0  ;;  %s252_s0 = inlined_call_operand.hbm [shape: f32[8,32], index: 0, kind: input, shape index: {}]   ;;  %s253_s1 = inlined_call_operand.hbm [shape: bf16[32,128], index: 1, kind: input, shape index: {}]   ;;  %s254_s2 = inlined_call_operand.vmem [shape: f32[1,128], index: 2, kind: input, shape index: {}]   ;;  %s255_s3 = inlined_call_operand.vmem [shape: f32[8,1], index: 3, kind: output, shape index: {}]  }
   0x1   :  { %9 = vsyncpa [#allocation5], 0  ;;  %s189_s12 = smov [#allocation2]   ;;  %s190_s14 = smov [#allocation4]  }
   0x2   :  { %s16_s13 = sshll.u32 %s189_s12, 4  ;;  %s25_s15 = sshll.u32 %s190_s14, 4  ;;  %s17_s13 = int_to_ptr.vmem [resolvable:$true] %s16_s13  ;;  %s215_s15 = int_to_ptr.vmem [resolvable:$true] %s25_s15 }
   0x3   :  { %s141_s18 = scalar_lea.hbm %s252_s0, 128 }
   0x4   :  { %p142_p0 = scmp.ne.s32.totalorder %s252_s0, %s141_s18  ;;  %p145_p1 = scmp.lt.u32.totalorder %s141_s18, %s252_s0 }
   0x6   :  { %p147_p2 = pnand %p145_p1, %p142_p0 }
   0x8   :  { %150 = shalt.err (!%p147_p2)
}
   0x9   :  { %s151_s23 = scalar_lea.vmem %s17_s13, 128  ;;  %p156_p4 = scmp.lt.s32.totalorder %s17_s13, %s17_s13 }
   0xa   :  { %p152_p3 = scmp.ne.s32.totalorder %s17_s13, %s151_s23  ;;  %p157_p5 = scmp.lt.s32.totalorder %s151_s23, %s151_s23 }
   0xc   :  { %p158_p6 = por %p157_p5, %p156_p4 }
   0xe   :  { %p159_p7 = pnand %p158_p6, %p152_p3 }
  0x10   :  { %162 = shalt.err (!%p159_p7)
}
  0x11   :  { %19 = dma.hbm_to_vmem [thread:$0]  %s252_s0, 128, %s17_s13, [#allocation3]  }
  0x12   :  { %s163_s28 = scalar_lea.hbm %s253_s1, 256 }
  0x13   :  { %p164_p8 = scmp.ne.s32.totalorder %s253_s1, %s163_s28  ;;  %p167_p9 = scmp.lt.u32.totalorder %s163_s28, %s253_s1 }
  0x15   :  { %p169_p10 = pnand %p167_p9, %p164_p8 }
  0x17   :  { %172 = shalt.err (!%p169_p10)
}
  0x18   :  { %s173_s6 = scalar_lea.vmem %s215_s15, 256  ;;  %p178_p12 = scmp.lt.s32.totalorder %s215_s15, %s215_s15 }
  0x19   :  { %p174_p11 = scmp.ne.s32.totalorder %s215_s15, %s173_s6  ;;  %p179_p13 = scmp.lt.s32.totalorder %s173_s6, %s173_s6 }
  0x1b   :  { %p180_p0 = por %p179_p13, %p178_p12 }
  0x1d   :  { %p181_p1 = pnand %p180_p0, %p174_p11 }
  0x1f   :  { %184 = shalt.err (!%p181_p1)
}
  0x20   :  { %s191_s0 = smov 64   ;;  %s192_s7 = smov 4  }
  0x21   :  { %31 = dma.hbm_to_vmem [thread:$0]  %s253_s1, 256, %s215_s15, [#allocation5], %s191_s0, %s191_s0, %s192_s7  }
  0x22   :  { %185 = dma.done.wait [#allocation3], 128  }
  0x23   :  { %186 = vsyncadd [#allocation3], 4294967168 }
  0x24   :  { %187 = dma.done.wait [#allocation5], 256  }
  0x25   :  { %188 = vsyncadd [#allocation5], 4294967040  ;;  %v193_v0 = vmov 0.0   ;;  %vm194_vm0 = vmmov 0   ;;  %v139_v1 = vld [vmem:[#allocation4] sm:$0xff]   ;;  %v140_v2 = vld [vmem:[#allocation4 + $0x8] sm:$0xff]  }
  0x26   :  { %125 = vmatprep.subr.bf16.mxu0 %v193_v0  ;;  %129 = vmatprep.mubr.msk.bf16.mxu0 %vm194_vm0, %v193_v0  ;;  %v41_v3 = vld [vmem:[#allocation2] sm:$0xff]  ;;  %vm66_vm1 = vcmask 261120   ;;  %v118_v5 = vld [vmem:[%s254_s2] ss:$0 sm:$0xff]  ;;  %vm110_vm2 = vcmask 7168  }
  0x27   :  { %126 = vmatpush3.bf16.msra.mxu0 %v139_v1  ;;  %v42_v4 = vpack.c.bf16 %v41_v3, %v41_v3 }
  0x28   :  { %127 = vmatprep.subr.bf16.mxu0 %v193_v0 }
  0x2b   :  { %128 = vmatpush3.bf16.msra.mxu0 %v140_v2 }
  0x2e   :  { %130 = vmatmul.mubr.msk.bf16.vlgmr.msra.gmra.mrb[0].mxu0 %vm66_vm1, %v42_v4 }
 0x101   :  { %v104_v6 = vpop.f32.mrb[0].mxu0 }
 0x102   :  { %v105_v7 = vadd.f32 %v118_v5, %v104_v6  ;;  %v131_v8 = vpop.f32.mrb[1].mxu0 }
 0x103   :  { %v107_v9 = vpop.f32.mrb[2].mxu0 }
 0x104   :  { %111 = vst.msk [vmem:[%s255_s3] sm:$0xff] %vm110_vm2, %v105_v7  ;;  %v132_v10 = vpop.f32.mrb[3].mxu0 }
 0x105   :  { %116 = vsyncpa [#allocation3], 1 }
 0x106   :  { %117 = vsyncpa [#allocation5], 1 }

</bundles_post_ra>
